<compile_context>
chip_gen: v5e
topology: v5e:2x2
jax: 0.10.0
libtpu: 0.0.40
codegen_flags: <defaults>
</compile_context>

<pallas_src>
import jax
import jax.numpy as jnp
from jax.experimental import pallas as pl
from jax.experimental.pallas import tpu as pltpu


def vae_forward_kernel(x_ref, w1_ref, b1_ref, wmv_ref, bmv_ref, eps_ref,
                       wd1_ref, bd1_ref, wd2_ref, bd2_ref,
                       xhat_ref, stats_ref):
    L = eps_ref.shape[-1]

    # ---- Encoder ----
    x = x_ref[...]
    h = jnp.dot(x.astype(jnp.bfloat16), w1_ref[...],
                preferred_element_type=jnp.float32) + b1_ref[...]
    h = jnp.maximum(h, 0.0)                                   # relu (f32 VPU)

    # Fused mean|log_var projection: one MXU pass with N = 2*L lanes,
    # stored as one packed slab (wider, denser store than 2x (B, L)).
    stats = jnp.dot(h.astype(jnp.bfloat16), wmv_ref[...],
                    preferred_element_type=jnp.float32) + bmv_ref[...]
    stats_ref[...] = stats                                    # [mean | log_var]

    mean = stats[:, :L]
    log_var = stats[:, L:]

    # reparameterization: z = mean + exp(0.5 * log_var) * eps   (f32)
    z = mean + jnp.exp(0.5 * log_var) * eps_ref[...]

    # ---- Decoder ----
    hd = jnp.dot(z.astype(jnp.bfloat16), wd1_ref[...],
                 preferred_element_type=jnp.float32) + bd1_ref[...]
    hd = jnp.maximum(hd, 0.0)                                  # relu

    logits = jnp.dot(hd.astype(jnp.bfloat16), wd2_ref[...],
                     preferred_element_type=jnp.float32) + bd2_ref[...]
    # sigmoid: exp on EUP, reciprocal on EUP (approx) instead of a VPU divide
    xhat_ref[...] = pl.reciprocal(1.0 + jnp.exp(-logits), approx=True)


def vae_forward(x, params, eps, *, tile_b=64):
    B, D_in = x.shape
    H = params["w1"].shape[1]
    L = eps.shape[1]
    D_out = params["wd2"].shape[1]
    assert B % tile_b == 0, "batch must be a multiple of the batch tile"

    def batched(feat):
        # batch-tiled activations / outputs
        return pl.BlockSpec((tile_b, feat), lambda i: (i, 0))

    def resident(shape):
        # full-array blocks with a constant index_map -> weights stay in VMEM
        return pl.BlockSpec(shape, lambda i: (0, 0))

    flops = 2 * B * (D_in * H + H * 2 * L + L * H + H * D_out)
    transcendentals = B * (L + 2 * D_out)                     # exp(std), exp+rcp(sigmoid)
    bytes_accessed = (x.nbytes + eps.nbytes
                      + sum(int(v.nbytes) for v in params.values())
                      + B * D_out * 4 + B * 2 * L * 4)

    x_hat, stats = pl.pallas_call(
        vae_forward_kernel,
        out_shape=(
            jax.ShapeDtypeStruct((B, D_out), jnp.float32),    # x_hat
            jax.ShapeDtypeStruct((B, 2 * L), jnp.float32),    # packed [mean | log_var]
        ),
        grid=(B // tile_b,),
        in_specs=[
            batched(D_in),                  # x
            resident((D_in, H)),            # w1   (bf16)
            resident((1, H)),               # b1
            resident((H, 2 * L)),           # wmv  (bf16, fused mean|var)
            resident((1, 2 * L)),           # bmv
            batched(L),                     # eps
            resident((L, H)),               # wd1  (bf16)
            resident((1, H)),               # bd1
            resident((H, D_out)),           # wd2  (bf16)
            resident((1, D_out)),           # bd2
        ],
        out_specs=(batched(D_out), batched(2 * L)),
        compiler_params=pltpu.CompilerParams(
            dimension_semantics=("parallel",)),               # megacore batch sharding
        cost_estimate=pl.CostEstimate(
            flops=flops, transcendentals=transcendentals,
            bytes_accessed=bytes_accessed),
    )(x, params["w1"], params["b1"], params["wmv"], params["bmv"], eps,
      params["wd1"], params["bd1"], params["wd2"], params["bd2"])

    mean = stats[:, :L]
    log_var = stats[:, L:]
    return x_hat, mean, log_var


def init_params(key, input_dim, hidden_dim, latent_dim, output_dim):
    """PyTorch nn.Linear-style init (U[-1/sqrt(fan_in), +]); weights stored bf16."""
    def linear(key, fan_in, fan_out):
        kw, kb = jax.random.split(key)
        bound = 1.0 / jnp.sqrt(fan_in)
        w = jax.random.uniform(kw, (fan_in, fan_out), jnp.float32, -bound, bound)
        b = jax.random.uniform(kb, (1, fan_out), jnp.float32, -bound, bound)
        return w, b

    keys = jax.random.split(key, 5)
    w1, b1 = linear(keys[0], input_dim, hidden_dim)      # Encoder.FC_input
    wm, bm = linear(keys[1], hidden_dim, latent_dim)     # Encoder.FC_mean
    wv, bv = linear(keys[2], hidden_dim, latent_dim)     # Encoder.FC_var
    wd1, bd1 = linear(keys[3], latent_dim, hidden_dim)   # Decoder.FC_hidden
    wd2, bd2 = linear(keys[4], hidden_dim, output_dim)   # Decoder.FC_output

    # Fuse mean / log_var projections host-side; weights bf16, biases f32.
    wmv = jnp.concatenate([wm, wv], axis=1)
    bmv = jnp.concatenate([bm, bv], axis=1)
    bf16 = lambda w: w.astype(jnp.bfloat16)
    return dict(w1=bf16(w1), b1=b1, wmv=bf16(wmv), bmv=bmv,
                wd1=bf16(wd1), bd1=bd1, wd2=bf16(wd2), bd2=bd2)


def reference_forward(x, params, eps):
    """Plain-JAX reference mirroring the kernel's bf16-input / f32-accum matmuls."""
    L = eps.shape[1]
    f32 = jnp.float32
    h = jnp.maximum(jnp.dot(x.astype(jnp.bfloat16), params["w1"],
                            preferred_element_type=f32) + params["b1"], 0.0)
    stats = jnp.dot(h.astype(jnp.bfloat16), params["wmv"],
                    preferred_element_type=f32) + params["bmv"]
    mean, log_var = stats[:, :L], stats[:, L:]
    z = mean + jnp.exp(0.5 * log_var) * eps
    hd = jnp.maximum(jnp.dot(z.astype(jnp.bfloat16), params["wd1"],
                             preferred_element_type=f32) + params["bd1"], 0.0)
    logits = jnp.dot(hd.astype(jnp.bfloat16), params["wd2"],
                     preferred_element_type=f32) + params["bd2"]
    return jax.nn.sigmoid(logits), mean, log_var


if __name__ == "__main__":
    # Small MLP-VAE shapes; batch grown per perf review so the MXU rows and
    # the batch grid are actually exercised.
    B, INPUT_DIM, HIDDEN_DIM, LATENT_DIM = 128, 256, 128, 32
    OUTPUT_DIM = INPUT_DIM
    TILE_B = 64

    key = jax.random.PRNGKey(0)
    k_params, k_x, k_eps = jax.random.split(key, 3)

    params = init_params(k_params, INPUT_DIM, HIDDEN_DIM, LATENT_DIM, OUTPUT_DIM)
    x = jax.random.uniform(k_x, (B, INPUT_DIM), jnp.float32)   # MNIST-like pixels
    # epsilon ~ N(0,1), drawn outside the kernel (torch.randn_like equivalent)
    eps = jax.random.normal(k_eps, (B, LATENT_DIM), jnp.float32)

    x_hat, mean, log_var = vae_forward(x, params, eps, tile_b=TILE_B)
    jax.block_until_ready((x_hat, mean, log_var))

    # sanity check against plain-JAX reference (same bf16 matmul inputs;
    # only the approx-EUP reciprocal in the sigmoid differs slightly)
    r_xhat, r_mean, r_logvar = reference_forward(x, params, eps)
    assert jnp.allclose(mean, r_mean, atol=5e-3)
    assert jnp.allclose(log_var, r_logvar, atol=5e-3)
    assert jnp.allclose(x_hat, r_xhat, atol=5e-3)

    print("KERNEL_OK")
</pallas_src>

<mosaic_0001>
module attributes {stable_mosaic.version = 11 : i64} {
  func.func @vae_forward_kernel(%arg0: i32, %arg1: memref<64x256xf32, #tpu.memory_space<vmem>>, %arg2: memref<256x128xbf16, #tpu.memory_space<vmem>>, %arg3: memref<1x128xf32, #tpu.memory_space<vmem>>, %arg4: memref<128x64xbf16, #tpu.memory_space<vmem>>, %arg5: memref<1x64xf32, #tpu.memory_space<vmem>>, %arg6: memref<64x32xf32, #tpu.memory_space<vmem>>, %arg7: memref<32x128xbf16, #tpu.memory_space<vmem>>, %arg8: memref<1x128xf32, #tpu.memory_space<vmem>>, %arg9: memref<128x256xbf16, #tpu.memory_space<vmem>>, %arg10: memref<1x256xf32, #tpu.memory_space<vmem>>, %arg11: memref<64x256xf32, #tpu.memory_space<vmem>>, %arg12: memref<64x64xf32, #tpu.memory_space<vmem>>) attributes {dimension_semantics = [#tpu.dimension_semantics<parallel>], iteration_bounds = array<i64: 2>, scalar_prefetch = 0 : i64, scratch_operands = 0 : i64, tpu.core_type = #tpu.core_type<tc>, window_params = [{transform_indices = @transform_0, window_bounds = array<i64: 64, 256>}, {pipeline_mode = #tpu.pipeline_mode<synchronous>, transform_indices = @transform_1, window_bounds = array<i64: 256, 128>}, {pipeline_mode = #tpu.pipeline_mode<synchronous>, transform_indices = @transform_2, window_bounds = array<i64: 1, 128>}, {pipeline_mode = #tpu.pipeline_mode<synchronous>, transform_indices = @transform_3, window_bounds = array<i64: 128, 64>}, {pipeline_mode = #tpu.pipeline_mode<synchronous>, transform_indices = @transform_4, window_bounds = array<i64: 1, 64>}, {transform_indices = @transform_5, window_bounds = array<i64: 64, 32>}, {pipeline_mode = #tpu.pipeline_mode<synchronous>, transform_indices = @transform_6, window_bounds = array<i64: 32, 128>}, {pipeline_mode = #tpu.pipeline_mode<synchronous>, transform_indices = @transform_7, window_bounds = array<i64: 1, 128>}, {pipeline_mode = #tpu.pipeline_mode<synchronous>, transform_indices = @transform_8, window_bounds = array<i64: 128, 256>}, {pipeline_mode = #tpu.pipeline_mode<synchronous>, transform_indices = @transform_9, window_bounds = array<i64: 1, 256>}, {transform_indices = @transform_10, window_bounds = array<i64: 64, 256>}, {transform_indices = @transform_11, window_bounds = array<i64: 64, 64>}]} {
    %c0 = arith.constant 0 : index
    %c0_0 = arith.constant 0 : index
    %0 = vector.load %arg1[%c0, %c0_0] : memref<64x256xf32, #tpu.memory_space<vmem>>, vector<64x256xf32>
    %1 = arith.truncf %0 : vector<64x256xf32> to vector<64x256xbf16>
    %c0_1 = arith.constant 0 : index
    %c0_2 = arith.constant 0 : index
    %2 = vector.load %arg2[%c0_1, %c0_2] : memref<256x128xbf16, #tpu.memory_space<vmem>>, vector<256x128xbf16>
    %cst = arith.constant dense<0.000000e+00> : vector<64x128xf32>
    %3 = tpu.matmul %1, %2, %cst {dimension_numbers = #tpu.dot_dimension_numbers<[1], [0], [0], [1], [0, 0, 1, 1], [], []>} : vector<64x256xbf16>, vector<256x128xbf16>, vector<64x128xf32> -> vector<64x128xf32>
    %c0_3 = arith.constant 0 : index
    %c0_4 = arith.constant 0 : index
    %4 = vector.load %arg3[%c0_3, %c0_4] : memref<1x128xf32, #tpu.memory_space<vmem>>, vector<1x128xf32>
    %5 = vector.broadcast %4 : vector<1x128xf32> to vector<64x128xf32>
    %6 = arith.addf %3, %5 : vector<64x128xf32>
    %cst_5 = arith.constant 0.000000e+00 : f32
    %7 = vector.broadcast %cst_5 : f32 to vector<64x128xf32>
    %8 = arith.maximumf %6, %7 : vector<64x128xf32>
    %9 = arith.truncf %8 : vector<64x128xf32> to vector<64x128xbf16>
    %c0_6 = arith.constant 0 : index
    %c0_7 = arith.constant 0 : index
    %10 = vector.load %arg4[%c0_6, %c0_7] : memref<128x64xbf16, #tpu.memory_space<vmem>>, vector<128x64xbf16>
    %cst_8 = arith.constant dense<0.000000e+00> : vector<64x64xf32>
    %11 = tpu.matmul %9, %10, %cst_8 {dimension_numbers = #tpu.dot_dimension_numbers<[1], [0], [0], [1], [0, 0, 1, 1], [], []>} : vector<64x128xbf16>, vector<128x64xbf16>, vector<64x64xf32> -> vector<64x64xf32>
    %c0_9 = arith.constant 0 : index
    %c0_10 = arith.constant 0 : index
    %12 = vector.load %arg5[%c0_9, %c0_10] : memref<1x64xf32, #tpu.memory_space<vmem>>, vector<1x64xf32>
    %13 = vector.broadcast %12 : vector<1x64xf32> to vector<64x64xf32>
    %14 = arith.addf %11, %13 : vector<64x64xf32>
    %c0_11 = arith.constant 0 : index
    %c0_12 = arith.constant 0 : index
    %15 = vector.load %arg12[%c0_11, %c0_12] : memref<64x64xf32, #tpu.memory_space<vmem>>, vector<64x64xf32>
    tpu.vector_store %arg12[%c0_11, %c0_12], %14 {strides = array<i32>} : memref<64x64xf32, #tpu.memory_space<vmem>>, vector<64x64xf32>,
    %16 = vector.extract_strided_slice %14 {offsets = [0, 0], sizes = [64, 32], strides = [1, 1]} : vector<64x64xf32> to vector<64x32xf32>
    %17 = vector.extract_strided_slice %14 {offsets = [0, 32], sizes = [64, 32], strides = [1, 1]} : vector<64x64xf32> to vector<64x32xf32>
    %cst_13 = arith.constant 5.000000e-01 : f32
    %18 = vector.broadcast %cst_13 : f32 to vector<64x32xf32>
    %19 = arith.mulf %18, %17 : vector<64x32xf32>
    %20 = math.exp %19 : vector<64x32xf32>
    %c0_14 = arith.constant 0 : index
    %c0_15 = arith.constant 0 : index
    %21 = vector.load %arg6[%c0_14, %c0_15] : memref<64x32xf32, #tpu.memory_space<vmem>>, vector<64x32xf32>
    %22 = arith.mulf %20, %21 : vector<64x32xf32>
    %23 = arith.addf %16, %22 : vector<64x32xf32>
    %24 = arith.truncf %23 : vector<64x32xf32> to vector<64x32xbf16>
    %c0_16 = arith.constant 0 : index
    %c0_17 = arith.constant 0 : index
    %25 = vector.load %arg7[%c0_16, %c0_17] : memref<32x128xbf16, #tpu.memory_space<vmem>>, vector<32x128xbf16>
    %cst_18 = arith.constant dense<0.000000e+00> : vector<64x128xf32>
    %26 = tpu.matmul %24, %25, %cst_18 {dimension_numbers = #tpu.dot_dimension_numbers<[1], [0], [0], [1], [0, 0, 1, 1], [], []>} : vector<64x32xbf16>, vector<32x128xbf16>, vector<64x128xf32> -> vector<64x128xf32>
    %c0_19 = arith.constant 0 : index
    %c0_20 = arith.constant 0 : index
    %27 = vector.load %arg8[%c0_19, %c0_20] : memref<1x128xf32, #tpu.memory_space<vmem>>, vector<1x128xf32>
    %28 = vector.broadcast %27 : vector<1x128xf32> to vector<64x128xf32>
    %29 = arith.addf %26, %28 : vector<64x128xf32>
    %cst_21 = arith.constant 0.000000e+00 : f32
    %30 = vector.broadcast %cst_21 : f32 to vector<64x128xf32>
    %31 = arith.maximumf %29, %30 : vector<64x128xf32>
    %32 = arith.truncf %31 : vector<64x128xf32> to vector<64x128xbf16>
    %c0_22 = arith.constant 0 : index
    %c0_23 = arith.constant 0 : index
    %33 = vector.load %arg9[%c0_22, %c0_23] : memref<128x256xbf16, #tpu.memory_space<vmem>>, vector<128x256xbf16>
    %cst_24 = arith.constant dense<0.000000e+00> : vector<64x256xf32>
    %34 = tpu.matmul %32, %33, %cst_24 {dimension_numbers = #tpu.dot_dimension_numbers<[1], [0], [0], [1], [0, 0, 1, 1], [], []>} : vector<64x128xbf16>, vector<128x256xbf16>, vector<64x256xf32> -> vector<64x256xf32>
    %c0_25 = arith.constant 0 : index
    %c0_26 = arith.constant 0 : index
    %35 = vector.load %arg10[%c0_25, %c0_26] : memref<1x256xf32, #tpu.memory_space<vmem>>, vector<1x256xf32>
    %36 = vector.broadcast %35 : vector<1x256xf32> to vector<64x256xf32>
    %37 = arith.addf %34, %36 : vector<64x256xf32>
    %cst_27 = arith.constant 0.000000e+00 : f32
    %38 = vector.broadcast %cst_27 : f32 to vector<64x256xf32>
    %39 = arith.subf %38, %37 : vector<64x256xf32>
    %40 = math.exp %39 : vector<64x256xf32>
    %cst_28 = arith.constant 1.000000e+00 : f32
    %41 = vector.broadcast %cst_28 : f32 to vector<64x256xf32>
    %42 = arith.addf %41, %40 : vector<64x256xf32>
    %43 = tpu.reciprocal %42 {approx = true} : vector<64x256xf32> -> vector<64x256xf32>
    %c0_29 = arith.constant 0 : index
    %c0_30 = arith.constant 0 : index
    %44 = vector.load %arg11[%c0_29, %c0_30] : memref<64x256xf32, #tpu.memory_space<vmem>>, vector<64x256xf32>
    tpu.vector_store %arg11[%c0_29, %c0_30], %43 {strides = array<i32>} : memref<64x256xf32, #tpu.memory_space<vmem>>, vector<64x256xf32>,
    return
  }
  func.func @transform_0(%arg0: i32) -> (i32, i32) {
    %c0_i32 = arith.constant 0 : i32
    %c0_i32_0 = arith.constant 0 : i32
    return %arg0, %c0_i32 : i32, i32
  }
  func.func @transform_1(%arg0: i32) -> (i32, i32) {
    %c0_i32 = arith.constant 0 : i32
    %c0_i32_0 = arith.constant 0 : i32
    %c0_i32_1 = arith.constant 0 : i32
    return %c0_i32, %c0_i32_0 : i32, i32
  }
  func.func @transform_2(%arg0: i32) -> (i32, i32) {
    %c0_i32 = arith.constant 0 : i32
    %c0_i32_0 = arith.constant 0 : i32
    %c0_i32_1 = arith.constant 0 : i32
    return %c0_i32, %c0_i32_0 : i32, i32
  }
  func.func @transform_3(%arg0: i32) -> (i32, i32) {
    %c0_i32 = arith.constant 0 : i32
    %c0_i32_0 = arith.constant 0 : i32
    %c0_i32_1 = arith.constant 0 : i32
    return %c0_i32, %c0_i32_0 : i32, i32
  }
  func.func @transform_4(%arg0: i32) -> (i32, i32) {
    %c0_i32 = arith.constant 0 : i32
    %c0_i32_0 = arith.constant 0 : i32
    %c0_i32_1 = arith.constant 0 : i32
    return %c0_i32, %c0_i32_0 : i32, i32
  }
  func.func @transform_5(%arg0: i32) -> (i32, i32) {
    %c0_i32 = arith.constant 0 : i32
    %c0_i32_0 = arith.constant 0 : i32
    return %arg0, %c0_i32 : i32, i32
  }
  func.func @transform_6(%arg0: i32) -> (i32, i32) {
    %c0_i32 = arith.constant 0 : i32
    %c0_i32_0 = arith.constant 0 : i32
    %c0_i32_1 = arith.constant 0 : i32
    return %c0_i32, %c0_i32_0 : i32, i32
  }
  func.func @transform_7(%arg0: i32) -> (i32, i32) {
    %c0_i32 = arith.constant 0 : i32
    %c0_i32_0 = arith.constant 0 : i32
    %c0_i32_1 = arith.constant 0 : i32
    return %c0_i32, %c0_i32_0 : i32, i32
  }
  func.func @transform_8(%arg0: i32) -> (i32, i32) {
    %c0_i32 = arith.constant 0 : i32
    %c0_i32_0 = arith.constant 0 : i32
    %c0_i32_1 = arith.constant 0 : i32
    return %c0_i32, %c0_i32_0 : i32, i32
  }
  func.func @transform_9(%arg0: i32) -> (i32, i32) {
    %c0_i32 = arith.constant 0 : i32
    %c0_i32_0 = arith.constant 0 : i32
    %c0_i32_1 = arith.constant 0 : i32
    return %c0_i32, %c0_i32_0 : i32, i32
  }
  func.func @transform_10(%arg0: i32) -> (i32, i32) {
    %c0_i32 = arith.constant 0 : i32
    %c0_i32_0 = arith.constant 0 : i32
    return %arg0, %c0_i32 : i32, i32
  }
  func.func @transform_11(%arg0: i32) -> (i32, i32) {
    %c0_i32 = arith.constant 0 : i32
    %c0_i32_0 = arith.constant 0 : i32
    return %arg0, %c0_i32 : i32, i32
  }
}

</mosaic_0001>

<bundles_post_ra>
// kernel: tpu_custom_call.1
= control target key start
LH: loop header
LB: loop body
LE: loop exit
PB: predicated region body
PF: predicated region fallthrough
CT: control target
= control target key end

     0   :  { %s2627_s0 = inlined_call_operand.hbm [shape: f32[128,256], index: 0, kind: input, shape index: {}]   ;;  %s2628_s1 = inlined_call_operand.vmem [shape: bf16[256,128], index: 1, kind: input, shape index: {}]   ;;  %s2629_s2 = inlined_call_operand.hbm [shape: f32[1,128], index: 2, kind: input, shape index: {}]   ;;  %s2630_s3 = inlined_call_operand.vmem [shape: bf16[128,64], index: 3, kind: input, shape index: {}]   ;;  %s2631_s4 = inlined_call_operand.hbm [shape: f32[1,64], index: 4, kind: input, shape index: {}]   ;;  %s2632_s5 = inlined_call_operand.vmem [shape: f32[128,32], index: 5, kind: input, shape index: {}]   ;;  %s2633_s6 = inlined_call_operand.hbm [shape: bf16[32,128], index: 6, kind: input, shape index: {}]   ;;  %s2634_s7 = inlined_call_operand.vmem [shape: f32[1,128], index: 7, kind: input, shape index: {}]   ;;  %s2635_s8 = inlined_call_operand.vmem [shape: bf16[128,256], index: 8, kind: input, shape index: {}]   ;;  %s2636_s9 = inlined_call_operand.vmem [shape: f32[1,256], index: 9, kind: input, shape index: {}]   ;;  %s2637_s10 = inlined_call_operand.hbm [shape: f32[128,256], index: 10, kind: output, shape index: {0}]   ;;  %s2638_s11 = inlined_call_operand.vmem [shape: f32[128,64], index: 11, kind: output, shape index: {1}]  }
   0x1   :  { %2640 = sst [smem:[#allocation17_spill]] %s2629_s2 }
   0x2   :  { %2641 = sst [smem:[#allocation18_spill]] %s2631_s4 }
   0x3   :  { %2642 = sst [smem:[#allocation19_spill]] %s2633_s6 }
   0x4   :  { %17 = vsyncpa [#allocation3], 0 }
   0x5   :  { %19 = vsyncpa [#allocation3 + $0x1], 0 }
   0x6   :  { %20 = vsyncpa [#allocation6], 0 }
   0x7   :  { %21 = vsyncpa [#allocation9], 0 }
   0x8   :  { %22 = vsyncpa [#allocation4], 0 }
   0x9   :  { %24 = vsyncpa [#allocation4 + $0x1], 0  ;;  %s2125_s17 = smov 0   ;;  %s2127_s18 = smov 0  }
   0xa   :  { %s2129_s19 = smov 0   ;;  %s2131_s20 = smov 0  }
   0xb LB: > { %2643 = sst [smem:[#allocation15_spill]] %s2048_s19  ;;  %s2146_s21 = sadd.s32 4294967295, %s2052_s20   ;;  %s2052_s20 = sphi %s2131_s20, %s2659_s20   ;;  %s2048_s19 = sphi %s2129_s19, %s2656_s19   ;;  %s2044_s18 = sphi %s2127_s18, %s2658_s18   ;;  %s2040_s17 = sphi %s2125_s17, %s2657_s17  }
   0xc   : > { %s1436_s22 = sadd.s32 4294967294, %s2052_s20   ;;  %p50_p0 = scmp.ne.s32.totalorder %s2044_s18, %s2040_s17 }
   0xd   : > { %p51_p1 = scmp.eq.s32.totalorder %s2146_s21, 0  ;;  %p268_p2 = scmp.eq.s32.totalorder %s2146_s21, 1 }
   0xe   : > { %p274_p3 = scmp.eq.s32.totalorder %s1436_s22, 1  ;;  %p1437_p5 = scmp.ge.s32.totalorder %s2052_s20, 1 }
   0xf   : > { %p2155_p4 = por %p51_p1, %p50_p0  ;;  %p307_p7 = scmp.lt.s32.totalorder %s2052_s20, 3 }
  0x10   : > { %p2160_p6 = por %p274_p3, %p50_p0  ;;  %s2646_s2 = sld [smem:[#allocation17_spill]] }
  0x11   : > { %p2168_p8 = pnand %p1437_p5, %p307_p7  ;;  %s2054_s29 = smov [#allocation5]  }
  0x12   : > { %s324_s30 = sshll.u32 %s2054_s29, 4  ;;  %s2648_s4 = sld [smem:[#allocation18_spill]]  ;;  %s325_s30 = int_to_ptr.vmem [resolvable:$true] %s324_s30 }
  0x13   : > { %p1706_p10 = pneg %p2168_p8  ;;  %s2650_s6 = sld [smem:[#allocation19_spill]] }
  0x14   : > { %s2055_s26 = smov [#allocation7]   ;;  %s2056_s12 = smov [#allocation8]  }
  0x15   : > { %p2180_p11 = pnand %p1706_p10, %p51_p1  ;;  %s339_s29 = sshll.u32 %s2055_s26, 4  ;;  %s340_s29 = int_to_ptr.vmem [resolvable:$true] %s339_s29 }
  0x16   : > { %s322_s27 = sshll.u32 %s2646_s2, 4  ;;  %s350_s13 = sshll.u32 %s2056_s12, 4  ;;  %s323_s27 = int_to_ptr.hbm [resolvable:$true] %s322_s27  ;;  %s351_s13 = int_to_ptr.vmem [resolvable:$true] %s350_s13 }
  0x17   : > { %1709 = dma.hbm_to_vmem [thread:$0]  (!%p2180_p11), %s323_s27, 16, %s325_s30, [#allocation6]  }
  0x18   : > { %s337_s14 = sshll.u32 %s2648_s4, 4  ;;  %s2057_s16 = smov 64   ;;  %s338_s14 = int_to_ptr.hbm [resolvable:$true] %s337_s14 }
  0x19   : > { %s348_s25 = sshll.u32 %s2650_s6, 4  ;;  %s2058_s22 = smov 4   ;;  %s349_s25 = int_to_ptr.hbm [resolvable:$true] %s348_s25 }
  0x1a   : > { %1712 = dma.hbm_to_vmem [thread:$0]  (!%p2180_p11), %s338_s14, 16, %s340_s29, [#allocation6]  }
  0x1b   : > { %1715 = dma.hbm_to_vmem [thread:$0]  (!%p2180_p11), %s349_s25, 256, %s351_s13, [#allocation9], %s2057_s16, %s2057_s16, %s2058_s22  }
  0x1c   : > { %s2194_s26 = sadd.s32 1, %s2052_s20   ;;  %s37_s30 = sadd.s32 1, %s2048_s19 }
  0x1d   : > { %s34_s27 = ssub.s32 %s2052_s20, %s2194_s26  ;;  %p44_p13 = scmp.ne.s32.totalorder %s2048_s19, %s2044_s18 }
  0x1e   : > { %p35_p12 = scmp.eq.s32.totalorder %s34_s27, 0  ;;  %p45_p0 = scmp.eq.s32.totalorder %s2052_s20, 0 }
  0x1f   : > { %p1727_p3 = scmp.lt.s32.totalorder %s2052_s20, 2  ;;  %p2208_p7 = por %p268_p2, %p44_p13 }
  0x20   : > { %s2204_s14 = scalar_select %p35_p12, %s2048_s19, %s37_s30  }
  0x21   : > { %p46_p5 = por %p45_p0, %p44_p13  ;;  %s373_s15 = sand.u32 1, %s2048_s19  }
  0x22   : > { %2651 = sst [smem:[#allocation16_spill]] %s2204_s14  ;;  %s1635_s25 = sshll.u32 %s2052_s20, 7 }
  0x23   : > { %s1442_s12 = sshll.u32 %s373_s15, 7  ;;  %s383_s22 = scalar_lea.hbm %s2627_s0, %s1635_s25 }
  0x24   : > { %s384_s27 = sshll.u32 %s383_s22, 4  ;;  %s377_s2 = scalar_lea.vmem [#allocation2], %s1442_s12  ;;  %s385_s27 = int_to_ptr.hbm [resolvable:$true] %s384_s27 }
  0x25   : > { %s386_s4 = sshll.u32 %s377_s2, 4  ;;  %p2219_p10 = pnand %p1727_p3, %p46_p5  ;;  %s387_s4 = int_to_ptr.vmem [resolvable:$true] %s386_s4 }
  0x26   : > { %s374_s6 = scalar_lea.sflag [#allocation3], %s373_s15  ;;  %s1948_s14 = sshra.s32 %s385_s27, 4  ;;  %s1949_s14 = int_to_ptr.hbm [resolvable:$true] %s1948_s14 }
  0x27   : > { %s1950_s19 = scalar_lea.hbm %s1949_s14, 128  ;;  %p1952_p11 = pneg %p2219_p10 }
  0x28   : > { %p1951_p2 = scmp.ne.s32.totalorder %s1949_s14, %s1950_s19  ;;  %s1955_s2 = scalar_lea.hbm %s2627_s0, 256 }
  0x29   : > { %p1956_p0 = scmp.lt.s32.totalorder %s1949_s14, %s2627_s0  ;;  %p1957_p3 = scmp.lt.s32.totalorder %s1955_s2, %s1950_s19 }
  0x2a   : > { %p1953_p12 = pnand %p1952_p11, %p1951_p2 }
  0x2b   : > { %p1958_p5 = por %p1957_p3, %p1956_p0 }
  0x2c   : > { %p1954_p13 = pneg %p1953_p12 }
  0x2e   : > { %p1959_p9 = pnand %p1958_p5, %p1954_p13 }
  0x30   : > { %1962 = shalt.err (!%p1959_p9)
}
  0x31   : > { %s2059_s15 = smov 256   ;;  %s2060_s22 = smov 16  }
  0x32   : > { %1719 = dma.hbm_to_vmem [thread:$0]  (!%p2219_p10), %s385_s27, 2048, %s387_s4, %s374_s6, %s2059_s15, %s2059_s15, %s2060_s22  }
  0x33   : > { %407 = sbr.rel (%p2168_p8) target bundleno = 968 (0x3c8), region = 60  ;;  %s2236_s25 = sand.u32 (!%p2168_p8), 1, %s2044_s18  }
  0x34   : > { %s1447_s14 = sshll.u32 (!%p2168_p8), %s2236_s25, 7  ;;  %s410_s19 = scalar_lea.sflag (!%p2168_p8), [#allocation3], %s2236_s25 }
  0x35   : > { %s2242_s12 = scalar_lea.vmem (!%p2168_p8), [#allocation2], %s1447_s14 }
  0x38   : > { %2023 = dma.done.wait (%p2155_p4), %s410_s19, 2048  }
  0x39   : > { %2025 = vsyncadd (%p2155_p4), %s410_s19, 4294965248 }
  0x3a   : > { %2027 = dma.done.wait (%p51_p1), [#allocation6], 32  }
  0x3b   : > { %2029 = vsyncadd (%p51_p1), [#allocation6], 4294967264 }
  0x3c   : > { %2031 = dma.done.wait (%p51_p1), [#allocation9], 256  }
  0x3d   : > { %2033 = vsyncadd (%p51_p1), [#allocation9], 4294967040  ;;  %v1643_v0 = vld [vmem:[%s2628_s1 + $0x38] sm:$0xff]  ;;  %v1642_v1 = vld [vmem:[%s2628_s1 + $0x30] sm:$0xff]  ;;  %s1452_s19 = sshll.u32 %s2146_s21, 3  ;;  %vm816_vm0 = vcmask 523264  }
  0x3e   : > { %1680 = vmatpush.bf16.msra.mxu1 %v1643_v0  ;;  %649 = vmatpush.bf16.msra.mxu0 %v1643_v0  ;;  %v1641_v2 = vld [vmem:[%s2628_s1 + $0x28] sm:$0xff]  ;;  %v1640_v3 = vld [vmem:[%s2628_s1 + $0x20] sm:$0xff]  ;;  %v1639_v4 = vld [vmem:[%s2628_s1 + $0x18] sm:$0xff]  ;;  %p480_p1 = scmp.lt.s32.totalorder %s1452_s19, 15  ;;  %s2062_s13 = smov 96   ;;  %vm961_vm1 = vcmask 261120  }
  0x3f   : > { %v1638_v5 = vld [vmem:[%s2628_s1 + $0x10] sm:$0xff]  ;;  %v1637_v6 = vld [vmem:[%s2628_s1 + $0x8] sm:$0xff]  ;;  %v1636_v7 = vld [vmem:[%s2628_s1] sm:$0xff]  ;;  %s1272_s27 = scalar_lea.sflag [#allocation4], %s2236_s25  ;;  %s1998_s16 = scalar_lea.hbm %s2637_s10, 256 }
  0x40   : > { %v501_v8 = vld [vmem:[%s2242_s12 + $0x40] sm:$0xff]  ;;  %v503_v9 = vld [vmem:[%s2242_s12 + $0x50] sm:$0xff]  ;;  %v1651_v12 = vld [vmem:[%s2628_s1 + $0x78] sm:$0xff]  ;;  %s2661_s19 = smov (!%p480_p1, %s1452_s19), 15 }
  0x41   : > { %v493_v10 = vld [vmem:[%s2242_s12] sm:$0xff]  ;;  %v495_v11 = vld [vmem:[%s2242_s12 + $0x10] sm:$0xff]  ;;  %v513_v13 = vpack.c.bf16 %v503_v9, %v501_v8  ;;  %v1649_v16 = vld [vmem:[%s2628_s1 + $0x68] sm:$0xff]  ;;  %s1453_s4 = sshll.u32 %s2661_s19, 3  ;;  %s2564_s19 = scalar_lea.vmem [#allocation10], %s1447_s14 }
  0x42   : > { %1681 = vmatpush.bf16.msra.mxu1 %v1642_v1  ;;  %650 = vmatpush.bf16.msra.mxu0 %v1642_v1  ;;  %v509_v14 = vpack.c.bf16 %v495_v11, %v493_v10  ;;  %v1650_v15 = vld [vmem:[%s2628_s1 + $0x70] sm:$0xff]  ;;  %v1648_v17 = vld [vmem:[%s2628_s1 + $0x60] sm:$0xff]  ;;  %v1647_v22 = vld [vmem:[%s2628_s1 + $0x58] sm:$0xff]  ;;  %s2353_s23 = scalar_lea.vmem %s2632_s5, %s1453_s4  ;;  %s2376_s2 = scalar_lea.vmem %s2638_s11, %s1453_s4 }
  0x43   : > { %v505_v18 = vld [vmem:[%s2242_s12 + $0x60] sm:$0xff]  ;;  %v507_v19 = vld [vmem:[%s2242_s12 + $0x70] sm:$0xff]  ;;  %v1645_v26 = vld [vmem:[%s2628_s1 + $0x48] sm:$0xff]  ;;  %s1679_s14 = sshll.u32 %s2146_s21, 7 }
  0x44   : > { %v497_v20 = vld [vmem:[%s2242_s12 + $0x20] sm:$0xff]  ;;  %v499_v21 = vld [vmem:[%s2242_s12 + $0x30] sm:$0xff]  ;;  %v515_v23 = vpack.c.bf16 %v507_v19, %v505_v18  ;;  %v494_v28 = vld [vmem:[%s2242_s12 + $0x8] sm:$0xff]  ;;  %s1289_s28 = scalar_lea.hbm %s2637_s10, %s1679_s14 }
  0x45   : > { %v511_v24 = vpack.c.bf16 %v499_v21, %v497_v20  ;;  %v1646_v25 = vld [vmem:[%s2628_s1 + $0x50] sm:$0xff]  ;;  %v1644_v27 = vld [vmem:[%s2628_s1 + $0x40] sm:$0xff]  ;;  %v496_v29 = vld [vmem:[%s2242_s12 + $0x18] sm:$0xff] }
  0x46   : > { %1682 = vmatpush.bf16.msra.mxu1 %v1641_v2  ;;  %651 = vmatpush.bf16.msra.mxu0 %v1641_v2  ;;  %v510_v30 = vpack.c.bf16 %v496_v29, %v494_v28  ;;  %v498_v31 = vld [vmem:[%s2242_s12 + $0x28] sm:$0xff]  ;;  %v500_v32 = vld [vmem:[%s2242_s12 + $0x38] sm:$0xff]  ;;  %v1658_v41 = vld [vmem:[%s2630_s3 + $0x30] sm:$0xff] }
  0x47   : > { %v512_v33 = vpack.c.bf16 %v500_v32, %v498_v31  ;;  %v502_v34 = vld [vmem:[%s2242_s12 + $0x48] sm:$0xff]  ;;  %v504_v35 = vld [vmem:[%s2242_s12 + $0x58] sm:$0xff]  ;;  %v1656_v43 = vld [vmem:[%s2630_s3 + $0x20] sm:$0xff] }
  0x48   : > { %v514_v36 = vpack.c.bf16 %v504_v35, %v502_v34  ;;  %v506_v37 = vld [vmem:[%s2242_s12 + $0x68] sm:$0xff]  ;;  %v508_v38 = vld [vmem:[%s2242_s12 + $0x78] sm:$0xff]  ;;  %v1654_v46 = vld [vmem:[%s2630_s3 + $0x10] sm:$0xff]  ;;  %s2061_s12 = smov 32  }
  0x49   : > { %v516_v39 = vpack.c.bf16 %v508_v38, %v506_v37  ;;  %v1659_v40 = vld [vmem:[%s2630_s3 + $0x38] sm:$0xff]  ;;  %v1657_v42 = vld [vmem:[%s2630_s3 + $0x28] sm:$0xff]  ;;  %v1652_v49 = vld [vmem:[%s2630_s3] sm:$0xff] }
  0x4a   : > { %1683 = vmatpush.bf16.msra.mxu1 %v1640_v3  ;;  %652 = vmatpush.bf16.msra.mxu0 %v1640_v3  ;;  %v1655_v44 = vld [vmem:[%s2630_s3 + $0x18] sm:$0xff]  ;;  %v1653_v47 = vld [vmem:[%s2630_s3 + $0x8] sm:$0xff]  ;;  %v1775_v55 = vld [vmem:[#allocation5] ss:$0 sm:$0xff] }
  0x4b   : > { %787 = vmatpush.bf16.msra.mxu2 %v1659_v40  ;;  %v849_v0 = vld [vmem:[%s2353_s23] sm:$0xff]  ;;  %v854_v18 = vld [vmem:[%s2353_s23 + $0x28] sm:$0xff] }
  0x4c   : > { %865 = vrot.lane.b32.xlu0 %v849_v0, %s2061_s12 }
  0x4e   : > { %1684 = vmatpush.bf16.msra.mxu1 %v1639_v4  ;;  %653 = vmatpush.bf16.msra.mxu0 %v1639_v4 }
  0x4f   : > { %788 = vmatpush.bf16.msra.mxu2 %v1658_v41 }
  0x52   : > { %1685 = vmatpush.bf16.msra.mxu1 %v1638_v5  ;;  %654 = vmatpush.bf16.msra.mxu0 %v1638_v5  ;;  %v850_v5 = vld [vmem:[%s2353_s23 + $0x8] sm:$0xff] }
  0x53   : > { %789 = vmatpush.bf16.msra.mxu2 %v1657_v42 }
  0x54   : > { %867 = vrot.lane.b32.xlu0 %v850_v5, %s2061_s12 }
  0x56   : > { %1686 = vmatpush.bf16.msra.mxu1 %v1637_v6  ;;  %655 = vmatpush.bf16.msra.mxu0 %v1637_v6 }
  0x57   : > { %790 = vmatpush.bf16.msra.mxu2 %v1656_v43 }
  0x5a   : > { %1687 = vmatpush.bf16.msra.mxu1 %v1636_v7  ;;  %656 = vmatpush.bf16.msra.mxu0 %v1636_v7 }
  0x5b   : > { %791 = vmatpush.bf16.msra.mxu2 %v1655_v44 }
  0x5d   : > { %667 = vmatmul.bf16.vlgmr.msra.gmra.mxu1 %v513_v13  ;;  %657 = vmatmul.bf16.vlgmr.msra.gmra.mxu0 %v509_v14  ;;  %v853_v14 = vld [vmem:[%s2353_s23 + $0x20] sm:$0xff] }
  0x5e   : > { %678 = vmatpush.bf16.msrb.mxu1 %v1651_v12  ;;  %v851_v12 = vld [vmem:[%s2353_s23 + $0x10] sm:$0xff]  ;;  %873 = vrot.lane.b32.xlu2 %v853_v14, %s2061_s12 }
  0x5f   : > { %792 = vmatpush.bf16.msra.mxu2 %v1654_v46  ;;  %869 = vrot.lane.b32.xlu1 %v851_v12, %s2061_s12 }
  0x62   : > { %679 = vmatpush.bf16.msrb.mxu1 %v1650_v15 }
  0x63   : > { %793 = vmatpush.bf16.msra.mxu2 %v1653_v47 }
  0x66   : > { %680 = vmatpush.bf16.msrb.mxu1 %v1649_v16  ;;  %v852_v16 = vld [vmem:[%s2353_s23 + $0x18] sm:$0xff]  ;;  %875 = vrot.lane.b32.xlu2 %v854_v18, %s2061_s12 }
  0x67   : > { %794 = vmatpush.bf16.msra.mxu2 %v1652_v49  ;;  %871 = vrot.lane.b32.xlu1 %v852_v16, %s2061_s12 }
  0x6a   : > { %681 = vmatpush.bf16.msrb.mxu1 %v1648_v17 }
  0x6d   : > { %672 = vmatmul.bf16.gmra.mxu1 %v515_v23  ;;  %662 = vmatmul.bf16.gmra.mxu0 %v511_v24 }
  0x6e   : > { %682 = vmatpush.bf16.msrb.mxu1 %v1647_v22 }
  0x72   : > { %683 = vmatpush.bf16.msrb.mxu1 %v1646_v25 }
  0x76   : > { %684 = vmatpush.bf16.msrb.mxu1 %v1645_v26  ;;  %v855_v26 = vld [vmem:[%s2353_s23 + $0x30] sm:$0xff] }
  0x77   : > { %877 = vrot.lane.b32.xlu2 %v855_v26, %s2061_s12  ;;  %v1660_v26 = vld [vmem:[#allocation8] sm:$0xff] }
  0x7a   : > { %685 = vmatpush.bf16.msrb.mxu1 %v1644_v27 }
  0x7d   : > { %686 = vmatmul.bf16.vlgmr.msrb.gmra.mxu1 %v510_v30 }
  0x8d   : > { %691 = vmatmul.bf16.gmra.mxu1 %v512_v33 }
  0x9d   : > { %696 = vmatmul.bf16.gmra.mxu1 %v514_v36  ;;  %v2369_v36 = vld [vmem:[#allocation7] ss:$0 sm:$0xff] }
  0xad   : > { %701 = vmatmul.bf16.gmra.mxu1 %v516_v39 }
  0xbe   : > { %v866_v43 = vpop.permute.xlu0 %865 }
  0xda   : > { %v668_v45 = vpop.f32.mrf.mxu1  ;;  %v658_v51 = vpop.f32.mrf.mxu0 }
  0xdb   : > { %v659_v56 = vadd.f32 %v1775_v55, %v658_v51  ;;  %v669_v17 = vadd.f32 %v1775_v55, %v668_v45  ;;  %v868_v51 = vpop.permute.xlu0 %867 }
  0xe2   : > { %v670_v48 = vpop.f32.mrf.mxu1  ;;  %v660_v53 = vpop.f32.mrf.mxu0 }
  0xe3   : > { %v661_v57 = vadd.f32 %v1775_v55, %v660_v53  ;;  %v671_v19 = vadd.f32 %v1775_v55, %v670_v48 }
  0xea   : > { %v673_v50 = vpop.f32.mrf.mxu1  ;;  %v663_v60 = vpop.f32.mrf.mxu0 }
  0xeb   : > { %v664_v3 = vadd.f32 %v1775_v55, %v663_v60  ;;  %v674_v28 = vadd.f32 %v1775_v55, %v673_v50 }
  0xf2   : > { %v675_v52 = vpop.f32.mrf.mxu1  ;;  %v665_v4 = vpop.f32.mrf.mxu0 }
  0xf3   : > { %v666_v7 = vadd.f32 %v1775_v55, %v665_v4  ;;  %v676_v29 = vadd.f32 %v1775_v55, %v675_v52 }
  0xfa   : > { %v687_v54 = vpop.f32.mrf.mxu1 }
  0xfb   : > { %v688_v58 = vadd.f32 %v687_v54, %v659_v56  ;;  %v856_v54 = vld [vmem:[%s2353_s23 + $0x38] sm:$0xff]  ;;  %s1290_s23 = sshll.u32 %s2564_s19, 4  ;;  %s1291_s23 = int_to_ptr.vmem [resolvable:$true] %s1290_s23 }
  0xfd   : > { %v707_v62 = vmax.f32 %v688_v58, 0.0  ;;  %v870_v58 = vpop.permute.xlu1 %869 }
 0x102   : > { %v689_v59 = vpop.f32.mrf.mxu1 }
 0x103   : > { %v690_v61 = vadd.f32 %v689_v59, %v661_v57 }
 0x105   : > { %v708_v63 = vmax.f32 %v690_v61, 0.0 }
 0x107   : > { %v715_v1 = vpack.c.bf16 %v708_v63, %v707_v62 }
 0x109   : > { %795 = vmatmul.bf16.vlgmr.msra.gmra.mxu2 %v715_v1 }
 0x10a   : > { %v692_v2 = vpop.f32.mrf.mxu1 }
 0x10b   : > { %v693_v6 = vadd.f32 %v692_v2, %v664_v3  ;;  %v872_v2 = vpop.permute.xlu1 %871 }
 0x10d   : > { %v709_v9 = vmax.f32 %v693_v6, 0.0  ;;  %v874_v6 = vpop.permute.xlu2 %873 }
 0x112   : > { %v694_v8 = vpop.f32.mrf.mxu1 }
 0x113   : > { %v695_v10 = vadd.f32 %v694_v8, %v666_v7 }
 0x115   : > { %v710_v11 = vmax.f32 %v695_v10, 0.0 }
 0x117   : > { %v716_v13 = vpack.c.bf16 %v710_v11, %v709_v9 }
 0x119   : > { %800 = vmatmul.bf16.gmra.mxu2 %v716_v13 }
 0x11a   : > { %v697_v15 = vpop.f32.mrf.mxu1 }
 0x11b   : > { %v698_v20 = vadd.f32 %v697_v15, %v669_v17  ;;  %v876_v15 = vpop.permute.xlu2 %875 }
 0x11d   : > { %v711_v23 = vmax.f32 %v698_v20, 0.0 }
 0x122   : > { %v699_v21 = vpop.f32.mrf.mxu1 }
 0x123   : > { %v700_v22 = vadd.f32 %v699_v21, %v671_v19 }
 0x125   : > { %v712_v24 = vmax.f32 %v700_v22, 0.0  ;;  %v878_v22 = vpop.permute.xlu2 %877 }
 0x127   : > { %v717_v25 = vpack.c.bf16 %v712_v24, %v711_v23 }
 0x129   : > { %805 = vmatmul.bf16.gmra.mxu2 %v717_v25  ;;  %v1661_v25 = vld [vmem:[#allocation8 + $0x8] sm:$0xff] }
 0x12a   : > { %v702_v27 = vpop.f32.mrf.mxu1  ;;  %980 = vmatpush.bf16.msrb.mxu2 %v1661_v25  ;;  %1688 = vmatpush.bf16.msra.mxu3 %v1661_v25  ;;  %v1576_v25 = vld [vmem:[%s2635_s8 + $0x18] sm:$0xf0] }
 0x12b   : > { %v703_v30 = vadd.f32 %v702_v27, %v674_v28 }
 0x12d   : > { %v713_v33 = vmax.f32 %v703_v30, 0.0 }
 0x12e   : > { %981 = vmatpush.bf16.msrb.mxu2 %v1660_v26  ;;  %1689 = vmatpush.bf16.msra.mxu3 %v1660_v26 }
 0x132   : > { %v704_v31 = vpop.f32.mrf.mxu1 }
 0x133   : > { %v705_v32 = vadd.f32 %v704_v31, %v676_v29 }
 0x135   : > { %v714_v34 = vmax.f32 %v705_v32, 0.0 }
 0x137   : > { %v718_v35 = vpack.c.bf16 %v714_v34, %v713_v33 }
 0x139   : > { %810 = vmatmul.bf16.gmra.mxu2 %v718_v35 }
 0x18c   : > { %v796_v37 = vpop.f32.mrf.mxu2 }
 0x18d   : > { %v2379_v38 = vadd.f32 %v2369_v36, %v796_v37 }
 0x18f   : > { %817 = vst.msk [vmem:[%s2376_s2] sm:$0xff] %vm816_vm0, %v2379_v38  ;;  %v825_v39 = vmul.f32 0.5, %v2379_v38 }
 0x191   : > { %v833_v40 = vmul.f32 1.442695, %v825_v39 }
 0x193   : > { %1778 = vpow2.f32 %v833_v40 }
 0x194   : > { %v798_v41 = vpop.f32.mrf.mxu2 }
 0x195   : > { %v2386_v42 = vadd.f32 %v2369_v36, %v798_v41 }
 0x197   : > { %818 = vst.msk [vmem:[%s2376_s2 + $0x8] sm:$0xff] %vm816_vm0, %v2386_v42  ;;  %v826_v44 = vmul.f32 0.5, %v2386_v42 }
 0x199   : > { %v1779_v45 = vpop.eup %1778  ;;  %v835_v46 = vmul.f32 1.442695, %v826_v44 }
 0x19a   : > { %v889_v47 = vmul.f32 %v1779_v45, %v866_v43 }
 0x19b   : > { %1780 = vpow2.f32 %v835_v46 }
 0x19c   : > { %v801_v48 = vpop.f32.mrf.mxu2  ;;  %905 = vrot.lane.b32.xlu0 %v889_v47, %s2062_s13  ;;  %v1622_v47 = vld [vmem:[%s2635_s8 + $0x70] sm:$0xf] }
 0x19d   : > { %v2394_v49 = vadd.f32 %v2369_v36, %v801_v48  ;;  %v1677_v48 = vld [vmem:[%s2635_s8 + $0x74] sm:$0xf0] }
 0x19f   : > { %819 = vst.msk [vmem:[%s2376_s2 + $0x10] sm:$0xff] %vm816_vm0, %v2394_v49  ;;  %v827_v50 = vmul.f32 0.5, %v2394_v49 }
 0x1a1   : > { %v1781_v52 = vpop.eup %1780  ;;  %v837_v53 = vmul.f32 1.442695, %v827_v50  ;;  %v1623_v50 = vor.u32 %v1677_v48, %v1622_v47 }
 0x1a2   : > { %v890_v55 = vmul.f32 %v1781_v52, %v868_v51  ;;  %v1624_v51 = vld [vmem:[%s2635_s8 + $0x78] sm:$0xf0] }
 0x1a3   : > { %1782 = vpow2.f32 %v837_v53  ;;  %1117 = vmatpush.bf16.msrb.mxu3 %v1623_v50  ;;  %v1614_v53 = vld [vmem:[%s2635_s8 + $0x60] sm:$0xf] }
 0x1a4   : > { %v803_v56 = vpop.f32.mrf.mxu2  ;;  %907 = vrot.lane.b32.xlu1 %v890_v55, %s2062_s13  ;;  %879 = vrot.lane.b32.xlu0 %v856_v54, %s2061_s12  ;;  %v1675_v54 = vld [vmem:[%s2635_s8 + $0x64] sm:$0xf0]  ;;  %v1674_v55 = vld [vmem:[%s2635_s8 + $0x64] sm:$0xf]  ;;  %s1292_s12 = sshll.u32 %s1289_s28, 4  ;;  %s1293_s12 = int_to_ptr.hbm [resolvable:$true] %s1292_s12 }
 0x1a5   : > { %v2404_v57 = vadd.f32 %v2369_v36, %v803_v56  ;;  %v1615_v56 = vor.u32 %v1675_v54, %v1614_v53  ;;  %s1992_s21 = sshra.s32 %s1293_s12, 4  ;;  %s1993_s21 = int_to_ptr.hbm [resolvable:$true] %s1992_s21 }
 0x1a6   : > { %s1994_s30 = scalar_lea.hbm %s1993_s21, 128  ;;  %p1999_p10 = scmp.lt.s32.totalorder %s1993_s21, %s2637_s10 }
 0x1a7   : > { %820 = vst.msk [vmem:[%s2376_s2 + $0x18] sm:$0xff] %vm816_vm0, %v2404_v57  ;;  %v828_v59 = vmul.f32 0.5, %v2404_v57  ;;  %1118 = vmatpush.bf16.msrb.mxu3 %v1615_v56  ;;  %p1995_p4 = scmp.ne.s32.totalorder %s1993_s21, %s1994_s30  ;;  %p2000_p2 = scmp.lt.s32.totalorder %s1998_s16, %s1994_s30 }
 0x1a9   : > { %v1783_v60 = vpop.eup %1782  ;;  %v839_v61 = vmul.f32 1.442695, %v828_v59  ;;  %v1673_v59 = vld [vmem:[%s2635_s8 + $0x54] sm:$0xf0]  ;;  %p1996_p8 = pnand %p1995_p4, %p2208_p7  ;;  %p2001_p11 = por %p2000_p2, %p1999_p10 }
 0x1aa   : > { %v891_v62 = vmul.f32 %v1783_v60, %v870_v58  ;;  %v1606_v58 = vld [vmem:[%s2635_s8 + $0x50] sm:$0xf] }
 0x1ab   : > { %1784 = vpow2.f32 %v839_v61  ;;  %v1672_v61 = vld [vmem:[%s2635_s8 + $0x54] sm:$0xf]  ;;  %p1997_p9 = pneg %p1996_p8 }
 0x1ac   : > { %v806_v63 = vpop.f32.mrf.mxu2  ;;  %909 = vrot.lane.b32.xlu1 %v891_v62, %s2062_s13  ;;  %v1608_v62 = vld [vmem:[%s2635_s8 + $0x58] sm:$0xf0] }
 0x1ad   : > { %v2412_v0 = vadd.f32 %v2369_v36, %v806_v63  ;;  %v1607_v63 = vor.u32 %v1673_v59, %v1606_v58  ;;  %p2002_p12 = pnand %p2001_p11, %p1997_p9 }
 0x1af   : > { %821 = vst.msk [vmem:[%s2376_s2 + $0x20] sm:$0xff] %vm816_vm0, %v2412_v0  ;;  %v829_v1 = vmul.f32 0.5, %v2412_v0  ;;  %1119 = vmatpush.bf16.msrb.mxu3 %v1607_v63 }
 0x1b1   : > { %v1785_v3 = vpop.eup %1784  ;;  %v841_v4 = vmul.f32 1.442695, %v829_v1  ;;  %v1598_v1 = vld [vmem:[%s2635_s8 + $0x40] sm:$0xf] }
 0x1b2   : > { %v892_v5 = vmul.f32 %v1785_v3, %v872_v2  ;;  %v1671_v2 = vld [vmem:[%s2635_s8 + $0x44] sm:$0xf0]  ;;  %v1670_v3 = vld [vmem:[%s2635_s8 + $0x44] sm:$0xf] }
 0x1b3   : > { %1786 = vpow2.f32 %v841_v4  ;;  %v1600_v4 = vld [vmem:[%s2635_s8 + $0x48] sm:$0xf0] }
 0x1b4   : > { %v808_v7 = vpop.f32.mrf.mxu2  ;;  %911 = vrot.lane.b32.xlu2 %v892_v5, %s2062_s13  ;;  %v1599_v5 = vor.u32 %v1671_v2, %v1598_v1  ;;  %v1031_v1 = vld [vmem:[%s2636_s9] sm:$0x3] }
 0x1b5   : > { %v809_v8 = vadd.f32 %v2369_v36, %v808_v7  ;;  %v1590_v7 = vld [vmem:[%s2635_s8 + $0x30] sm:$0xf]  ;;  %v2553_v2 = vperm.slane %v1031_v1, 1 }
 0x1b6   : > { %1120 = vmatpush.bf16.msrb.mxu3 %v1599_v5 }
 0x1b7   : > { %822 = vst.msk [vmem:[%s2376_s2 + $0x28] sm:$0xff] %vm816_vm0, %v809_v8  ;;  %v830_v9 = vmul.f32 0.5, %v809_v8 }
 0x1b9   : > { %v1787_v10 = vpop.eup %1786  ;;  %v843_v11 = vmul.f32 1.442695, %v830_v9  ;;  %v1668_v9 = vld [vmem:[%s2635_s8 + $0x34] sm:$0xf] }
 0x1ba   : > { %v893_v12 = vmul.f32 %v1787_v10, %v874_v6  ;;  %v1603_v6 = vor.u32 %v1670_v3, %v1600_v4 }
 0x1bb   : > { %1788 = vpow2.f32 %v843_v11  ;;  %v1592_v11 = vld [vmem:[%s2635_s8 + $0x38] sm:$0xf0] }
 0x1bc   : > { %v811_v13 = vpop.f32.mrf.mxu2  ;;  %913 = vrot.lane.b32.xlu0 %v893_v12, %s2062_s13  ;;  %v1595_v12 = vor.u32 %v1668_v9, %v1592_v11 }
 0x1bd   : > { %v2424_v14 = vadd.f32 %v2369_v36, %v811_v13  ;;  %v1582_v13 = vld [vmem:[%s2635_s8 + $0x20] sm:$0xf] }
 0x1bf   : > { %823 = vst.msk [vmem:[%s2376_s2 + $0x30] sm:$0xff] %vm816_vm0, %v2424_v14  ;;  %v831_v16 = vmul.f32 0.5, %v2424_v14 }
 0x1c1   : > { %v1789_v17 = vpop.eup %1788  ;;  %v845_v18 = vmul.f32 1.442695, %v831_v16  ;;  %v1666_v16 = vld [vmem:[%s2635_s8 + $0x24] sm:$0xf] }
 0x1c2   : > { %v894_v19 = vmul.f32 %v1789_v17, %v876_v15  ;;  %v1667_v15 = vld [vmem:[%s2635_s8 + $0x24] sm:$0xf0] }
 0x1c3   : > { %1790 = vpow2.f32 %v845_v18  ;;  %v1583_v17 = vor.u32 %v1667_v15, %v1582_v13  ;;  %v1584_v18 = vld [vmem:[%s2635_s8 + $0x28] sm:$0xf0] }
 0x1c4   : > { %v813_v20 = vpop.f32.mrf.mxu2  ;;  %915 = vrot.lane.b32.xlu1 %v894_v19, %s2062_s13  ;;  %v1587_v19 = vor.u32 %v1666_v16, %v1584_v18 }
 0x1c5   : > { %v2432_v21 = vadd.f32 %v2369_v36, %v813_v20  ;;  %v1574_v20 = vld [vmem:[%s2635_s8 + $0x10] sm:$0xf] }
 0x1c7   : > { %824 = vst.msk [vmem:[%s2376_s2 + $0x38] sm:$0xff] %vm816_vm0, %v2432_v21  ;;  %v832_v27 = vmul.f32 0.5, %v2432_v21 }
 0x1c9   : > { %v1791_v23 = vpop.eup %1790  ;;  %v847_v28 = vmul.f32 1.442695, %v832_v27  ;;  %v1566_v27 = vld [vmem:[%s2635_s8] sm:$0xf] }
 0x1ca   : > { %v895_v24 = vmul.f32 %v1791_v23, %v878_v22  ;;  %v1665_v22 = vld [vmem:[%s2635_s8 + $0x14] sm:$0xf0]  ;;  %v1664_v23 = vld [vmem:[%s2635_s8 + $0x14] sm:$0xf] }
 0x1cb   : > { %1792 = vpow2.f32 %v847_v28  ;;  %v1579_v26 = vor.u32 %v1664_v23, %v1576_v25  ;;  %v1663_v28 = vld [vmem:[%s2635_s8 + $0x4] sm:$0xf0] }
 0x1cc   : > { %917 = vrot.lane.b32.xlu2 %v895_v24, %s2062_s13  ;;  %v1575_v24 = vor.u32 %v1665_v22, %v1574_v20 }
 0x1d1   : > { %v1793_v30 = vpop.eup %1792 }
 0x20e   : > { %v906_v29 = vpop.permute.xlu0 %905  ;;  %v912_v39 = vpop.permute.xlu2 %911 }
 0x20f   : > { %v929_v33 = vadd.f32 %v906_v29, %v2379_v38  ;;  %v932_v41 = vadd.f32 %v912_v39, %v2404_v57  ;;  %v1616_v57 = vld [vmem:[%s2635_s8 + $0x68] sm:$0xf0]  ;;  %v1662_v29 = vld [vmem:[%s2635_s8 + $0x4] sm:$0xf] }
 0x210   : > { %v1619_v60 = vor.u32 %v1674_v55, %v1616_v57 }
 0x216   : > { %v908_v31 = vpop.permute.xlu1 %907  ;;  %v880_v32 = vpop.permute.xlu0 %879 }
 0x217   : > { %v930_v34 = vadd.f32 %v908_v31, %v2386_v42  ;;  %v896_v35 = vmul.f32 %v1793_v30, %v880_v32  ;;  %v1567_v30 = vor.u32 %v1663_v28, %v1566_v27  ;;  %v1568_v31 = vld [vmem:[%s2635_s8 + $0x8] sm:$0xf0] }
 0x219   : > { %v937_v36 = vpack.c.bf16 %v930_v34, %v929_v33  ;;  %919 = vrot.lane.b32.xlu0 %v896_v35, %s2062_s13  ;;  %v1571_v33 = vor.u32 %v1662_v29, %v1568_v31 }
 0x21b   : > { %1560 = vmatmul.msk.bf16.vlgmr.msrb.gmra.mxu2 %vm961_vm1, %v937_v36 }
 0x21e   : > { %v910_v37 = vpop.permute.xlu1 %909 }
 0x21f   : > { %v931_v40 = vadd.f32 %v910_v37, %v2394_v49  ;;  %v1676_v49 = vld [vmem:[%s2635_s8 + $0x74] sm:$0xf] }
 0x220   : > { %v1627_v52 = vor.u32 %v1676_v49, %v1624_v51 }
 0x221   : > { %v938_v43 = vpack.c.bf16 %v932_v41, %v931_v40  ;;  %v1777_v40 = vld [vmem:[%s2634_s7] ss:$0 sm:$0xff] }
 0x222   : > { %1146 = vmatpush.bf16.msrb.mxu0 %v1627_v52 }
 0x226   : > { %1147 = vmatpush.bf16.msrb.mxu0 %v1619_v60  ;;  %v918_v32 = vpop.permute.xlu2 %917 }
 0x227   : > { %v935_v35 = vadd.f32 %v918_v32, %v2424_v14 }
 0x22b   : > { %1561 = vmatmul.msk.bf16.gmra.mxu2 %vm961_vm1, %v938_v43 }
 0x22e   : > { %v914_v44 = vpop.permute.xlu0 %913 }
 0x22f   : > { %v933_v42 = vadd.f32 %v914_v44, %v2412_v0  ;;  %v1611_v0 = vor.u32 %v1672_v61, %v1608_v62 }
 0x231   : > { %1148 = vmatpush.bf16.msrb.mxu0 %v1611_v0 }
 0x235   : > { %1149 = vmatpush.bf16.msrb.mxu0 %v1603_v6  ;;  %v2556_v6 = vperm.slane %v1031_v1, 0 }
 0x236   : > { %v916_v38 = vpop.permute.xlu1 %915 }
 0x237   : > { %v934_v45 = vadd.f32 %v916_v38, %v809_v8  ;;  %v1669_v8 = vld [vmem:[%s2635_s8 + $0x34] sm:$0xf0] }
 0x238   : > { %v1591_v10 = vor.u32 %v1669_v8, %v1590_v7 }
 0x239   : > { %v939_v46 = vpack.c.bf16 %v934_v45, %v933_v42  ;;  %1150 = vmatpush.bf16.msrb.mxu0 %v1595_v12 }
 0x23a   : > { %1121 = vmatpush.bf16.msrb.mxu3 %v1591_v10 }
 0x23b   : > { %1562 = vmatmul.msk.bf16.vlgmr.msra.gmra.mxu3 %vm961_vm1, %v939_v46 }
 0x23d   : > { %1151 = vmatpush.bf16.msrb.mxu0 %v1587_v19 }
 0x23e   : > { %1122 = vmatpush.bf16.msrb.mxu3 %v1583_v17 }
 0x241   : > { %1152 = vmatpush.bf16.msrb.mxu0 %v1579_v26 }
 0x242   : > { %1123 = vmatpush.bf16.msrb.mxu3 %v1575_v24 }
 0x245   : > { %1153 = vmatpush.bf16.msrb.mxu0 %v1571_v33 }
 0x246   : > { %1124 = vmatpush.bf16.msrb.mxu3 %v1567_v30 }
 0x28b   : > { %v920_v34 = vpop.permute.xlu0 %919 }
 0x28c   : > { %v936_v36 = vadd.f32 %v920_v34, %v2432_v21 }
 0x28e   : > { %v940_v37 = vpack.c.bf16 %v936_v36, %v935_v35 }
 0x290   : > { %1563 = vmatmul.msk.bf16.gmra.mxu3 %vm961_vm1, %v940_v37 }
 0x29e   : > { %v983_v39 = vpop.f32.mrf.mxu2 }
 0x29f   : > { %v984_v41 = vadd.f32 %v1777_v40, %v983_v39 }
 0x2a1   : > { %v1003_v38 = vmax.f32 %v984_v41, 0.0 }
 0x2a6   : > { %v985_v43 = vpop.f32.mrf.mxu2 }
 0x2a7   : > { %v986_v44 = vadd.f32 %v1777_v40, %v985_v43 }
 0x2a9   : > { %v1004_v42 = vmax.f32 %v986_v44, 0.0 }
 0x2ab   : > { %v1011_v45 = vpack.c.bf16 %v1004_v42, %v1003_v38 }
 0x2ad   : > { %1125 = vmatmul.bf16.vlgmr.msrb.gmra.mxu3 %v1011_v45  ;;  %1154 = vmatmul.bf16.vlgmr.msrb.gmra.mxu0 %v1011_v45 }
 0x2ae   : > { %v988_v46 = vpop.f32.mrf.mxu2 }
 0x2af   : > { %v989_v14 = vadd.f32 %v1777_v40, %v988_v46 }
 0x2b1   : > { %v1005_v48 = vmax.f32 %v989_v14, 0.0 }
 0x2b6   : > { %v990_v47 = vpop.f32.mrf.mxu2 }
 0x2b7   : > { %v991_v21 = vadd.f32 %v1777_v40, %v990_v47 }
 0x2b9   : > { %v1006_v49 = vmax.f32 %v991_v21, 0.0 }
 0x2bb   : > { %v1012_v50 = vpack.c.bf16 %v1006_v49, %v1005_v48 }
 0x2bd   : > { %1130 = vmatmul.bf16.gmra.mxu3 %v1012_v50  ;;  %1159 = vmatmul.bf16.gmra.mxu0 %v1012_v50 }
 0x2be   : > { %v993_v51 = vpop.f32.mrf.mxu3 }
 0x2bf   : > { %v994_v52 = vadd.f32 %v1777_v40, %v993_v51 }
 0x2c1   : > { %v1007_v55 = vmax.f32 %v994_v52, 0.0 }
 0x2c6   : > { %v995_v53 = vpop.f32.mrf.mxu3 }
 0x2c7   : > { %v996_v54 = vadd.f32 %v1777_v40, %v995_v53 }
 0x2c9   : > { %v1008_v56 = vmax.f32 %v996_v54, 0.0 }
 0x2cb   : > { %v1013_v57 = vpack.c.bf16 %v1008_v56, %v1007_v55 }
 0x2cd   : > { %1135 = vmatmul.bf16.gmra.mxu3 %v1013_v57  ;;  %1164 = vmatmul.bf16.gmra.mxu0 %v1013_v57 }
 0x313   : > { %v998_v58 = vpop.f32.mrf.mxu3 }
 0x314   : > { %v999_v59 = vadd.f32 %v1777_v40, %v998_v58 }
 0x316   : > { %v1009_v62 = vmax.f32 %v999_v59, 0.0 }
 0x31b   : > { %v1000_v60 = vpop.f32.mrf.mxu3 }
 0x31c   : > { %v1001_v61 = vadd.f32 %v1777_v40, %v1000_v60 }
 0x31e   : > { %v1010_v63 = vmax.f32 %v1001_v61, 0.0 }
 0x320   : > { %v1014_v0 = vpack.c.bf16 %v1010_v63, %v1009_v62 }
 0x322   : > { %1140 = vmatmul.bf16.gmra.mxu3 %v1014_v0  ;;  %1169 = vmatmul.bf16.gmra.mxu0 %v1014_v0 }
 0x32a   : > { %v1155_v3 = vpop.f32.mrf.mxu0 }
 0x32b   : > { %v1156_v4 = vadd.f32 %v1155_v3, %v2553_v2 }
 0x32d   : > { %v1176_v5 = vsub.f32 0.0, %v1156_v4 }
 0x32f   : > { %v1193_v7 = vmul.f32 1.442695, %v1176_v5 }
 0x330   : > { %v1126_v8 = vpop.f32.mrf.mxu3 }
 0x331   : > { %1794 = vpow2.f32 %v1193_v7  ;;  %v1127_v9 = vadd.f32 %v1126_v8, %v2556_v6 }
 0x332   : > { %v1157_v10 = vpop.f32.mrf.mxu0 }
 0x333   : > { %v1175_v11 = vsub.f32 0.0, %v1127_v9  ;;  %v1158_v12 = vadd.f32 %v1157_v10, %v2553_v2 }
 0x335   : > { %v1191_v13 = vmul.f32 1.442695, %v1175_v11  ;;  %v1178_v15 = vsub.f32 0.0, %v1158_v12 }
 0x337   : > { %v1795_v16 = vpop.eup %1794  ;;  %1796 = vpow2.f32 %v1191_v13  ;;  %v1197_v17 = vmul.f32 1.442695, %v1178_v15 }
 0x338   : > { %v1224_v18 = vadd.f32 1.0, %v1795_v16  ;;  %v1128_v19 = vpop.f32.mrf.mxu3 }
 0x339   : > { %1798 = vpow2.f32 %v1197_v17  ;;  %v1129_v20 = vadd.f32 %v1128_v19, %v2556_v6 }
 0x33a   : > { %1800 = vrcp.f32 %v1224_v18  ;;  %v1160_v22 = vpop.f32.mrf.mxu0 }
 0x33b   : > { %v1177_v23 = vsub.f32 0.0, %v1129_v20  ;;  %v1161_v24 = vadd.f32 %v1160_v22, %v2553_v2 }
 0x33d   : > { %v1797_v25 = vpop.eup %1796  ;;  %v1195_v26 = vmul.f32 1.442695, %v1177_v23  ;;  %v1180_v27 = vsub.f32 0.0, %v1161_v24 }
 0x33e   : > { %v1223_v28 = vadd.f32 1.0, %v1797_v25 }
 0x33f   : > { %v1799_v29 = vpop.eup %1798  ;;  %1802 = vpow2.f32 %v1195_v26  ;;  %v1201_v30 = vmul.f32 1.442695, %v1180_v27 }
 0x340   : > { %v1801_v31 = vpop.eup %1800  ;;  %1804 = vrcp.f32 %v1223_v28  ;;  %v1226_v32 = vadd.f32 1.0, %v1799_v29  ;;  %v1131_v33 = vpop.f32.mrf.mxu3 }
 0x341   : > { %1256 = vst [vmem:[%s2564_s19 + $0x8] sm:$0xff] %v1801_v31  ;;  %1806 = vpow2.f32 %v1201_v30  ;;  %v1132_v34 = vadd.f32 %v1131_v33, %v2556_v6 }
 0x342   : > { %1808 = vrcp.f32 %v1226_v32  ;;  %v1162_v35 = vpop.f32.mrf.mxu0 }
 0x343   : > { %v1179_v36 = vsub.f32 0.0, %v1132_v34  ;;  %v1163_v37 = vadd.f32 %v1162_v35, %v2553_v2 }
 0x345   : > { %v1803_v39 = vpop.eup %1802  ;;  %v1199_v40 = vmul.f32 1.442695, %v1179_v36  ;;  %v1182_v41 = vsub.f32 0.0, %v1163_v37 }
 0x346   : > { %v1805_v43 = vpop.eup %1804  ;;  %v1225_v44 = vadd.f32 1.0, %v1803_v39 }
 0x347   : > { %v1807_v38 = vpop.eup %1806  ;;  %1255 = vst [vmem:[%s2564_s19] sm:$0xff] %v1805_v43  ;;  %1810 = vpow2.f32 %v1199_v40  ;;  %v1205_v42 = vmul.f32 1.442695, %v1182_v41 }
 0x348   : > { %v1809_v45 = vpop.eup %1808  ;;  %1812 = vrcp.f32 %v1225_v44  ;;  %v1228_v46 = vadd.f32 1.0, %v1807_v38  ;;  %v1133_v14 = vpop.f32.mrf.mxu3 }
 0x349   : > { %1258 = vst [vmem:[%s2564_s19 + $0x18] sm:$0xff] %v1809_v45  ;;  %1814 = vpow2.f32 %v1205_v42  ;;  %v1134_v47 = vadd.f32 %v1133_v14, %v2556_v6 }
 0x34a   : > { %1816 = vrcp.f32 %v1228_v46  ;;  %v1165_v21 = vpop.f32.mrf.mxu0 }
 0x34b   : > { %v1181_v48 = vsub.f32 0.0, %v1134_v47  ;;  %v1166_v49 = vadd.f32 %v1165_v21, %v2553_v2 }
 0x34d   : > { %v1811_v50 = vpop.eup %1810  ;;  %v1203_v51 = vmul.f32 1.442695, %v1181_v48  ;;  %v1184_v52 = vsub.f32 0.0, %v1166_v49 }
 0x34e   : > { %v1813_v53 = vpop.eup %1812  ;;  %v1227_v54 = vadd.f32 1.0, %v1811_v50 }
 0x34f   : > { %v1815_v55 = vpop.eup %1814  ;;  %1257 = vst [vmem:[%s2564_s19 + $0x10] sm:$0xff] %v1813_v53  ;;  %1818 = vpow2.f32 %v1203_v51  ;;  %v1209_v56 = vmul.f32 1.442695, %v1184_v52 }
 0x350   : > { %v1817_v57 = vpop.eup %1816  ;;  %1820 = vrcp.f32 %v1227_v54  ;;  %v1230_v58 = vadd.f32 1.0, %v1815_v55  ;;  %v1136_v59 = vpop.f32.mrf.mxu3 }
 0x351   : > { %1260 = vst [vmem:[%s2564_s19 + $0x28] sm:$0xff] %v1817_v57  ;;  %1822 = vpow2.f32 %v1209_v56  ;;  %v1137_v60 = vadd.f32 %v1136_v59, %v2556_v6 }
 0x352   : > { %1824 = vrcp.f32 %v1230_v58  ;;  %v1167_v61 = vpop.f32.mrf.mxu0 }
 0x353   : > { %v1183_v62 = vsub.f32 0.0, %v1137_v60  ;;  %v1168_v63 = vadd.f32 %v1167_v61, %v2553_v2 }
 0x355   : > { %v1819_v0 = vpop.eup %1818  ;;  %v1207_v1 = vmul.f32 1.442695, %v1183_v62  ;;  %v1186_v3 = vsub.f32 0.0, %v1168_v63 }
 0x356   : > { %v1821_v4 = vpop.eup %1820  ;;  %v1229_v5 = vadd.f32 1.0, %v1819_v0 }
 0x357   : > { %v1823_v7 = vpop.eup %1822  ;;  %1259 = vst [vmem:[%s2564_s19 + $0x20] sm:$0xff] %v1821_v4  ;;  %1826 = vpow2.f32 %v1207_v1  ;;  %v1213_v8 = vmul.f32 1.442695, %v1186_v3 }
 0x358   : > { %v1825_v9 = vpop.eup %1824  ;;  %1828 = vrcp.f32 %v1229_v5  ;;  %v1232_v10 = vadd.f32 1.0, %v1823_v7  ;;  %v1138_v11 = vpop.f32.mrf.mxu3 }
 0x359   : > { %1262 = vst [vmem:[%s2564_s19 + $0x38] sm:$0xff] %v1825_v9  ;;  %1830 = vpow2.f32 %v1213_v8  ;;  %v1139_v12 = vadd.f32 %v1138_v11, %v2556_v6 }
 0x35a   : > { %1832 = vrcp.f32 %v1232_v10 }
 0x35b   : > { %v1185_v13 = vsub.f32 0.0, %v1139_v12 }
 0x35d   : > { %v1827_v15 = vpop.eup %1826  ;;  %v1211_v16 = vmul.f32 1.442695, %v1185_v13 }
 0x35e   : > { %v1829_v17 = vpop.eup %1828  ;;  %v1231_v18 = vadd.f32 1.0, %v1827_v15 }
 0x35f   : > { %v1831_v19 = vpop.eup %1830  ;;  %1261 = vst [vmem:[%s2564_s19 + $0x30] sm:$0xff] %v1829_v17  ;;  %1834 = vpow2.f32 %v1211_v16 }
 0x360   : > { %v1833_v20 = vpop.eup %1832  ;;  %1836 = vrcp.f32 %v1231_v18  ;;  %v1234_v22 = vadd.f32 1.0, %v1831_v19 }
 0x361   : > { %1264 = vst [vmem:[%s2564_s19 + $0x48] sm:$0xff] %v1833_v20 }
 0x362   : > { %1838 = vrcp.f32 %v1234_v22 }
 0x365   : > { %v1835_v23 = vpop.eup %1834 }
 0x366   : > { %v1837_v24 = vpop.eup %1836  ;;  %v1233_v25 = vadd.f32 1.0, %v1835_v23 }
 0x367   : > { %1263 = vst [vmem:[%s2564_s19 + $0x40] sm:$0xff] %v1837_v24 }
 0x368   : > { %v1839_v26 = vpop.eup %1838  ;;  %1840 = vrcp.f32 %v1233_v25 }
 0x369   : > { %1266 = vst [vmem:[%s2564_s19 + $0x58] sm:$0xff] %v1839_v26 }
 0x36e   : > { %v1841_v27 = vpop.eup %1840 }
 0x36f   : > { %1265 = vst [vmem:[%s2564_s19 + $0x50] sm:$0xff] %v1841_v27 }
 0x39f   : > { %v1170_v28 = vpop.f32.mrf.mxu0 }
 0x3a0   : > { %v1171_v29 = vadd.f32 %v1170_v28, %v2553_v2 }
 0x3a2   : > { %v1188_v30 = vsub.f32 0.0, %v1171_v29 }
 0x3a4   : > { %v1217_v31 = vmul.f32 1.442695, %v1188_v30 }
 0x3a5   : > { %v1141_v32 = vpop.f32.mrf.mxu3 }
 0x3a6   : > { %1842 = vpow2.f32 %v1217_v31  ;;  %v1142_v33 = vadd.f32 %v1141_v32, %v2556_v6 }
 0x3a7   : > { %v1172_v34 = vpop.f32.mrf.mxu0 }
 0x3a8   : > { %v1187_v35 = vsub.f32 0.0, %v1142_v33  ;;  %v1173_v36 = vadd.f32 %v1172_v34, %v2553_v2 }
 0x3aa   : > { %v1215_v37 = vmul.f32 1.442695, %v1187_v35  ;;  %v1190_v39 = vsub.f32 0.0, %v1173_v36 }
 0x3ac   : > { %v1843_v40 = vpop.eup %1842  ;;  %1844 = vpow2.f32 %v1215_v37  ;;  %v1221_v41 = vmul.f32 1.442695, %v1190_v39 }
 0x3ad   : > { %v1236_v43 = vadd.f32 1.0, %v1843_v40  ;;  %v1143_v44 = vpop.f32.mrf.mxu3 }
 0x3ae   : > { %1846 = vpow2.f32 %v1221_v41  ;;  %v1144_v38 = vadd.f32 %v1143_v44, %v2556_v6 }
 0x3af   : > { %1848 = vrcp.f32 %v1236_v43 }
 0x3b0   : > { %v1189_v42 = vsub.f32 0.0, %v1144_v38 }
 0x3b2   : > { %v1845_v45 = vpop.eup %1844  ;;  %v1219_v46 = vmul.f32 1.442695, %v1189_v42 }
 0x3b3   : > { %v1235_v14 = vadd.f32 1.0, %v1845_v45 }
 0x3b4   : > { %v1847_v2 = vpop.eup %1846  ;;  %1850 = vpow2.f32 %v1219_v46 }
 0x3b5   : > { %v1849_v47 = vpop.eup %1848  ;;  %1852 = vrcp.f32 %v1235_v14  ;;  %v1238_v21 = vadd.f32 1.0, %v1847_v2 }
 0x3b6   : > { %1268 = vst [vmem:[%s2564_s19 + $0x68] sm:$0xff] %v1849_v47 }
 0x3b7   : > { %1854 = vrcp.f32 %v1238_v21 }
 0x3ba   : > { %v1851_v48 = vpop.eup %1850 }
 0x3bb   : > { %v1853_v6 = vpop.eup %1852  ;;  %v1237_v49 = vadd.f32 1.0, %v1851_v48 }
 0x3bc   : > { %1267 = vst [vmem:[%s2564_s19 + $0x60] sm:$0xff] %v1853_v6 }
 0x3bd   : > { %v1855_v50 = vpop.eup %1854  ;;  %1856 = vrcp.f32 %v1237_v49 }
 0x3be   : > { %1270 = vst [vmem:[%s2564_s19 + $0x78] sm:$0xff] %v1855_v50 }
 0x3c3   : > { %v1857_v51 = vpop.eup %1856 }
 0x3c4   : > { %1269 = vst [vmem:[%s2564_s19 + $0x70] sm:$0xff] %v1857_v51 }
 0x3c5   : > { %2005 = shalt.err (!%p2002_p12)
}
 0x3c6   : > { %s2063_s25 = smov 256   ;;  %s2064_s19 = smov 16  }
 0x3c7   : > { %1704 = dma.vmem_to_hbm [thread:$0]  (%p2208_p7), %s1291_s23, 2048, %s1293_s12, %s1272_s27, %s2063_s25, %s2063_s25, %s2064_s19  }
 0x3c8 PF: > { %s1311_s14 = sand.u32 1, %s2040_s17   ;;  %p2654_p13 = scmp.ge.s32.totalorder %s2052_s20, 2 }
 0x3c9   : > { %s1312_s4 = scalar_lea.sflag [#allocation4], %s1311_s14 }
 0x3ca   : > { %p1721_p0 = pnand %p2654_p13, %p2160_p6 }
 0x3cc   : > { %p1722_p3 = pneg %p1721_p0 }
 0x3ce   : > { %2035 = dma.done.wait (%p1722_p3), %s1312_s4, 2048  }
 0x3cf   : > { %2037 = vsyncadd (%p1722_p3), %s1312_s4, 4294965248  ;;  %s2655_s6 = sld [smem:[#allocation15_spill]]  ;;  %p27_p5 = scmp.ge.s32.totalorder %s2194_s26, 4  }
 0x3d0   : > { %s2656_s19 = sld [smem:[#allocation16_spill]]  ;;  %s2657_s17 = smov %s2044_s18 }
 0x3d1   : > { %s2659_s20 = smov %s2194_s26  ;;  %29 = sbr.rel (!%p27_p5) target bundleno = 11 (0xb), region = 132 }
 0x3d5   : > { %s2658_s18 = smov %s2655_s6 }
 0x3d6   :  { %1326 = vsyncpa [#allocation3], 1 }
 0x3d7   :  { %1328 = vsyncpa [#allocation3 + $0x1], 1 }
 0x3d8   :  { %1329 = vsyncpa [#allocation6], 1 }
 0x3d9   :  { %1330 = vsyncpa [#allocation9], 1 }
 0x3da   :  { %1331 = vsyncpa [#allocation4], 1 }
 0x3db   :  { %1333 = vsyncpa [#allocation4 + $0x1], 1 }

</bundles_post_ra>
